<compile_context>
chip_gen: v7x
topology: tpu7x:2x2x1
jax: 0.10.0
libtpu: 0.0.40
codegen_flags: <defaults>
</compile_context>

<pallas_src>
import jax
import jax.numpy as jnp
from jax import lax
from jax.experimental import pallas as pl
from jax.experimental.pallas import tpu as pltpu


def _round_up(x, m):
    return (x + m - 1) // m * m


def _cdiv(a, b):
    return (a + b - 1) // b


def _make_ips_kernel(B, L, tb, tl, num_ji, need_row_mask, need_col_mask):
    n_chunks = tl // 128

    def kernel(out_ref, lab_ref, ip_ref, partial_ref, acc_ref):
        jo = pl.program_id(0)
        i = pl.program_id(1)
        ji = pl.program_id(2)

        # Fresh accumulator at the start of every (j_outer, i) reduction.
        @pl.when(ji == 0)
        def _():
            acc_ref[...] = jnp.zeros_like(acc_ref)

        if need_row_mask:
            row_ids = i * tb + lax.broadcasted_iota(jnp.int32, (tb, 128), 0)
            row_ok = row_ids < B                                # (tb, 128)
        if need_col_mask:
            lane = lax.broadcasted_iota(jnp.int32, (1, 128), 1)  # (1, 128)
            # Unclamped global column base: the index_map clamps the block it
            # actually reads; a fully out-of-range block masks to zero here.
            col_base = (jo * num_ji + ji) * tl

        # Fold the tile into the (tb, 128) accumulator chunk by chunk so the
        # live f32 intermediate never exceeds a few (tb, 128) slabs.
        acc = acc_ref[...]
        for c in range(n_chunks):
            lo, hi = c * 128, (c + 1) * 128
            o = out_ref[:, lo:hi].astype(jnp.float32)
            t = lab_ref[:, lo:hi].astype(jnp.float32)
            p = ip_ref[:, lo:hi].astype(jnp.float32)            # (1, 128), broadcasts
            d = o - t
            w = d * d * p                                       # (tb, 128) f32
            if need_row_mask and need_col_mask:
                m = row_ok & ((col_base + lo + lane) < L)
            elif need_row_mask:
                m = row_ok
            elif need_col_mask:
                m = (col_base + lo + lane) < L
            else:
                m = None
            if m is not None:
                w = jnp.where(m, w, 0.0)
            acc = acc + w
        acc_ref[...] = acc

        # Finalize once per (j_outer, i): sublane reduce -> (1, 128) lane partials.
        @pl.when(ji == pl.num_programs(2) - 1)
        def _():
            partial_ref[...] = jnp.sum(acc_ref[...], axis=0, keepdims=True)

    return kernel


def xmc_ips_loss(output, label, inverse_propensity):
    """output, label: (B, L); inverse_propensity: (L,) or (1, L). Returns f32 scalar."""
    output = jnp.asarray(output)
    label = jnp.asarray(label)

    # Clamp working dtype to bf16/f32 (avoid accidental f64 / integer promotion).
    dt = jnp.promote_types(output.dtype, label.dtype)
    work_dt = jnp.bfloat16 if dt == jnp.bfloat16 else jnp.float32
    output = output.astype(work_dt)
    label = label.astype(work_dt)
    ip = jnp.asarray(inverse_propensity, jnp.float32).reshape(1, -1)

    B, L = output.shape
    assert ip.shape[1] == L, "inverse_propensity must have one entry per label"

    itemsize = 2 if work_dt == jnp.bfloat16 else 4
    sub = 16 if itemsize == 2 else 8

    # ---- Tile selection: minimize padding, keep ~8 MiB streamed per step ----
    L128 = _round_up(L, 128)
    B_sub = _round_up(B, sub)
    tl_target = 4096 if itemsize == 2 else 2048
    tb_target = 512

    num_j = _cdiv(L128, tl_target)
    tl = _round_up(_cdiv(L128, num_j), 128)
    num_i = _cdiv(B_sub, tb_target)
    tb = _round_up(_cdiv(B_sub, num_i), sub)

    # v7x megacore: guarantee >= 2 blocks on a parallel axis when possible by
    # splitting the label axis into (outer parallel, inner arbitrary) chunks.
    num_jo = 2 if (num_i == 1 and num_j >= 2) else 1
    num_ji = _cdiv(num_j, num_jo)

    need_row_mask = (num_i * tb != B)
    need_col_mask = (num_jo * num_ji * tl != L)

    kernel = _make_ips_kernel(B, L, tb, tl, num_ji, need_row_mask, need_col_mask)

    def lab_block(jo, i, ji):
        # Clamp so an "extra" step (odd num_j split) re-reads the last valid
        # block; its contribution is fully masked to zero in the kernel.
        return (i, jnp.minimum(jo * num_ji + ji, num_j - 1))

    def ip_block(jo, i, ji):
        return (0, jnp.minimum(jo * num_ji + ji, num_j - 1))

    def out_block(jo, i, ji):
        return (0, jo * num_i + i)

    # ---- VMEM budget: double-buffered inputs + scratch + chunk temps ----
    working = 2 * 2 * tb * tl * itemsize        # output/label tiles, 2 buffers each
    working += 2 * tl * 4                       # propensity row (double-buffered)
    working += tb * 128 * 4                     # accumulator scratch
    working += 6 * tb * 128 * 4                 # per-chunk f32 intermediates
    working += 2 * num_jo * num_i * 128 * 4     # output partial blocks
    vmem_limit = int(min(max(working + (8 << 20), 32 << 20), 40 << 20))

    cost = pl.CostEstimate(
        flops=4 * B * L,
        transcendentals=0,
        bytes_accessed=2 * B * L * itemsize + L * 4 + num_jo * num_i * 128 * 4,
    )

    partials = pl.pallas_call(
        kernel,
        out_shape=jax.ShapeDtypeStruct((1, num_jo * num_i * 128), jnp.float32),
        grid_spec=pltpu.PrefetchScalarGridSpec(
            num_scalar_prefetch=0,
            grid=(num_jo, num_i, num_ji),
            in_specs=[
                pl.BlockSpec((tb, tl), lab_block),   # output tile
                pl.BlockSpec((tb, tl), lab_block),   # label tile
                pl.BlockSpec((1, tl), ip_block),     # propensity row
            ],
            # One lane-dense 128-wide partial block per (j_outer, i), resident
            # across the inner label (reduction) axis.
            out_specs=pl.BlockSpec((1, 128), out_block),
            scratch_shapes=[pltpu.VMEM((tb, 128), jnp.float32)],
        ),
        compiler_params=pltpu.CompilerParams(
            dimension_semantics=("parallel", "parallel", "arbitrary"),
            vmem_limit_bytes=vmem_limit,
        ),
        cost_estimate=cost,
    )(output, label, ip)

    # Tiny tree-like reduction of per-block lane partials in plain XLA.
    return jnp.sum(partials)


if __name__ == "__main__":
    key = jax.random.PRNGKey(0)
    keys = jax.random.split(key, 8)

    # Test 1: f32, ragged shapes -> row + lane masking, single block.
    B, L = 6, 200
    out1 = jax.random.normal(keys[0], (B, L), dtype=jnp.float32)
    lab1 = (jax.random.uniform(keys[1], (B, L)) > 0.9).astype(jnp.float32)
    ip1 = 1.0 + jax.random.uniform(keys[2], (L,), dtype=jnp.float32) * 4.0
    loss1 = jax.block_until_ready(xmc_ips_loss(out1, lab1, ip1))
    ref1 = jnp.sum(jnp.square(out1 - lab1) * ip1[None, :])
    assert jnp.allclose(loss1, ref1, rtol=2e-4, atol=1e-3), (loss1, ref1)

    # Test 2: bf16 inputs, exactly-tiled shapes -> mask-free fast path.
    B2, L2 = 16, 384
    out2 = jax.random.normal(keys[3], (B2, L2), dtype=jnp.bfloat16)
    lab2 = (jax.random.uniform(keys[4], (B2, L2)) > 0.9).astype(jnp.bfloat16)
    ip2 = jnp.linspace(1.0, 5.0, L2, dtype=jnp.float32)
    loss2 = jax.block_until_ready(xmc_ips_loss(out2, lab2, ip2))
    ref2 = jnp.sum(
        jnp.square(out2.astype(jnp.float32) - lab2.astype(jnp.float32)) * ip2[None, :]
    )
    assert jnp.allclose(loss2, ref2, rtol=2e-4, atol=1e-2), (loss2, ref2)

    # Test 3: f32, label axis split across 2 outer parallel chunks with an odd
    # tile count (exercises the clamped, fully-masked extra block).
    B3, L3 = 12, 4200
    out3 = jax.random.normal(keys[5], (B3, L3), dtype=jnp.float32)
    lab3 = (jax.random.uniform(keys[6], (B3, L3)) > 0.95).astype(jnp.float32)
    ip3 = 1.0 + jax.random.uniform(keys[7], (L3,), dtype=jnp.float32) * 4.0
    loss3 = jax.block_until_ready(xmc_ips_loss(out3, lab3, ip3))
    ref3 = jnp.sum(jnp.square(out3 - lab3) * ip3[None, :])
    assert jnp.allclose(loss3, ref3, rtol=2e-4, atol=1e-2), (loss3, ref3)

    print("KERNEL_OK")
</pallas_src>

<mosaic_0001>
module attributes {stable_mosaic.version = 11 : i64} {
  func.func @kernel(%arg0: i32, %arg1: i32, %arg2: i32, %arg3: memref<8x256xf32, #tpu.memory_space<vmem>>, %arg4: memref<8x256xf32, #tpu.memory_space<vmem>>, %arg5: memref<1x256xf32, #tpu.memory_space<vmem>>, %arg6: memref<1x128xf32, #tpu.memory_space<vmem>>, %arg7: memref<8x128xf32, #tpu.memory_space<vmem>>) attributes {dimension_semantics = [#tpu.dimension_semantics<parallel>, #tpu.dimension_semantics<parallel>, #tpu.dimension_semantics<arbitrary>], iteration_bounds = array<i64: 1, 1, 1>, scalar_prefetch = 0 : i64, scratch_operands = 1 : i64, tpu.core_type = #tpu.core_type<tc>, window_params = [{transform_indices = @transform_0, window_bounds = array<i64: 8, 256>}, {transform_indices = @transform_1, window_bounds = array<i64: 8, 256>}, {transform_indices = @transform_2, window_bounds = array<i64: 1, 256>}, {transform_indices = @transform_3, window_bounds = array<i64: 1, 128>}]} {
    %c0_i32 = arith.constant 0 : i32
    %0 = arith.cmpi eq, %arg2, %c0_i32 : i32
    %1 = arith.extui %0 : i1 to i32
    %c0_i32_0 = arith.constant 0 : i32
    %2 = arith.cmpi ne, %1, %c0_i32_0 : i32
    scf.if %2 {
      %cst_20 = arith.constant 0.000000e+00 : f32
      %52 = vector.broadcast %cst_20 : f32 to vector<8x128xf32>
      %c0_21 = arith.constant 0 : index
      %c0_22 = arith.constant 0 : index
      %53 = vector.load %arg7[%c0_21, %c0_22] : memref<8x128xf32, #tpu.memory_space<vmem>>, vector<8x128xf32>
      tpu.vector_store %arg7[%c0_21, %c0_22], %52 {strides = array<i32>} : memref<8x128xf32, #tpu.memory_space<vmem>>, vector<8x128xf32>,
    } else {
    }
    %c8_i32 = arith.constant 8 : i32
    %3 = arith.muli %arg1, %c8_i32 : i32
    %4 = tpu.iota {dimensions = array<i32: 0>} : vector<8x128xi32>
    %5 = vector.broadcast %3 : i32 to vector<8x128xi32>
    %6 = arith.addi %5, %4 : vector<8x128xi32>
    %c6_i32 = arith.constant 6 : i32
    %7 = vector.broadcast %c6_i32 : i32 to vector<8x128xi32>
    %8 = arith.cmpi slt, %6, %7 : vector<8x128xi32>
    %9 = tpu.iota {dimensions = array<i32: 1>} : vector<1x128xi32>
    %c1_i32 = arith.constant 1 : i32
    %10 = arith.muli %arg0, %c1_i32 : i32
    %11 = arith.addi %10, %arg2 : i32
    %c256_i32 = arith.constant 256 : i32
    %12 = arith.muli %11, %c256_i32 : i32
    %c0 = arith.constant 0 : index
    %c0_1 = arith.constant 0 : index
    %13 = vector.load %arg7[%c0, %c0_1] : memref<8x128xf32, #tpu.memory_space<vmem>>, vector<8x128xf32>
    %c0_2 = arith.constant 0 : index
    %c0_3 = arith.constant 0 : index
    %14 = vector.load %arg3[%c0_2, %c0_3] : memref<8x256xf32, #tpu.memory_space<vmem>>, vector<8x128xf32>
    %c0_4 = arith.constant 0 : index
    %c0_5 = arith.constant 0 : index
    %15 = vector.load %arg4[%c0_4, %c0_5] : memref<8x256xf32, #tpu.memory_space<vmem>>, vector<8x128xf32>
    %c0_6 = arith.constant 0 : index
    %c0_7 = arith.constant 0 : index
    %16 = vector.load %arg5[%c0_6, %c0_7] : memref<1x256xf32, #tpu.memory_space<vmem>>, vector<1x128xf32>
    %17 = arith.subf %14, %15 : vector<8x128xf32>
    %18 = arith.mulf %17, %17 : vector<8x128xf32>
    %19 = vector.broadcast %16 : vector<1x128xf32> to vector<8x128xf32>
    %20 = arith.mulf %18, %19 : vector<8x128xf32>
    %c0_i32_8 = arith.constant 0 : i32
    %21 = arith.addi %12, %c0_i32_8 : i32
    %22 = vector.broadcast %21 : i32 to vector<1x128xi32>
    %23 = arith.addi %22, %9 : vector<1x128xi32>
    %c200_i32 = arith.constant 200 : i32
    %24 = vector.broadcast %c200_i32 : i32 to vector<1x128xi32>
    %25 = arith.cmpi slt, %23, %24 : vector<1x128xi32>
    %26 = vector.broadcast %25 : vector<1x128xi1> to vector<8x128xi1>
    %27 = arith.andi %8, %26 : vector<8x128xi1>
    %cst = arith.constant 0.000000e+00 : f32
    %28 = vector.broadcast %cst : f32 to vector<8x128xf32>
    %29 = arith.select %27, %20, %28 : vector<8x128xi1>, vector<8x128xf32>
    %30 = arith.addf %13, %29 : vector<8x128xf32>
    %c0_9 = arith.constant 0 : index
    %c128 = arith.constant 128 : index
    %31 = vector.load %arg3[%c0_9, %c128] : memref<8x256xf32, #tpu.memory_space<vmem>>, vector<8x128xf32>
    %c0_10 = arith.constant 0 : index
    %c128_11 = arith.constant 128 : index
    %32 = vector.load %arg4[%c0_10, %c128_11] : memref<8x256xf32, #tpu.memory_space<vmem>>, vector<8x128xf32>
    %c0_12 = arith.constant 0 : index
    %c128_13 = arith.constant 128 : index
    %33 = vector.load %arg5[%c0_12, %c128_13] : memref<1x256xf32, #tpu.memory_space<vmem>>, vector<1x128xf32>
    %34 = arith.subf %31, %32 : vector<8x128xf32>
    %35 = arith.mulf %34, %34 : vector<8x128xf32>
    %36 = vector.broadcast %33 : vector<1x128xf32> to vector<8x128xf32>
    %37 = arith.mulf %35, %36 : vector<8x128xf32>
    %c128_i32 = arith.constant 128 : i32
    %38 = arith.addi %12, %c128_i32 : i32
    %39 = vector.broadcast %38 : i32 to vector<1x128xi32>
    %40 = arith.addi %39, %9 : vector<1x128xi32>
    %c200_i32_14 = arith.constant 200 : i32
    %41 = vector.broadcast %c200_i32_14 : i32 to vector<1x128xi32>
    %42 = arith.cmpi slt, %40, %41 : vector<1x128xi32>
    %43 = vector.broadcast %42 : vector<1x128xi1> to vector<8x128xi1>
    %44 = arith.andi %8, %43 : vector<8x128xi1>
    %cst_15 = arith.constant 0.000000e+00 : f32
    %45 = vector.broadcast %cst_15 : f32 to vector<8x128xf32>
    %46 = arith.select %44, %37, %45 : vector<8x128xi1>, vector<8x128xf32>
    %47 = arith.addf %30, %46 : vector<8x128xf32>
    %c0_16 = arith.constant 0 : index
    %c0_17 = arith.constant 0 : index
    %48 = vector.load %arg7[%c0_16, %c0_17] : memref<8x128xf32, #tpu.memory_space<vmem>>, vector<8x128xf32>
    tpu.vector_store %arg7[%c0_16, %c0_17], %47 {strides = array<i32>} : memref<8x128xf32, #tpu.memory_space<vmem>>, vector<8x128xf32>,
    %c0_i32_18 = arith.constant 0 : i32
    %49 = arith.cmpi eq, %arg2, %c0_i32_18 : i32
    %50 = arith.extui %49 : i1 to i32
    %c0_i32_19 = arith.constant 0 : i32
    %51 = arith.cmpi ne, %50, %c0_i32_19 : i32
    scf.if %51 {
      %c0_20 = arith.constant 0 : index
      %c0_21 = arith.constant 0 : index
      %52 = vector.load %arg7[%c0_20, %c0_21] : memref<8x128xf32, #tpu.memory_space<vmem>>, vector<8x128xf32>
      %cst_22 = arith.constant dense<0.000000e+00> : vector<128xf32>
      %53 = vector.multi_reduction <add>, %52, %cst_22 [0] : vector<8x128xf32> to vector<128xf32>
      %54 = vector.shape_cast %53 : vector<128xf32> to vector<1x128xf32>
      %c0_23 = arith.constant 0 : index
      %c0_24 = arith.constant 0 : index
      %55 = vector.load %arg6[%c0_23, %c0_24] : memref<1x128xf32, #tpu.memory_space<vmem>>, vector<1x128xf32>
      tpu.vector_store %arg6[%c0_23, %c0_24], %54 {strides = array<i32>} : memref<1x128xf32, #tpu.memory_space<vmem>>, vector<1x128xf32>,
    } else {
    }
    return
  }
  func.func @transform_0(%arg0: i32, %arg1: i32, %arg2: i32) -> (i32, i32) {
    %c1_i32 = arith.constant 1 : i32
    %0 = arith.muli %arg0, %c1_i32 : i32
    %1 = arith.addi %0, %arg2 : i32
    %c0_i32 = arith.constant 0 : i32
    %2 = arith.minsi %1, %c0_i32 : i32
    %c0_i32_0 = arith.constant 0 : i32
    return %arg1, %2 : i32, i32
  }
  func.func @transform_1(%arg0: i32, %arg1: i32, %arg2: i32) -> (i32, i32) {
    %c1_i32 = arith.constant 1 : i32
    %0 = arith.muli %arg0, %c1_i32 : i32
    %1 = arith.addi %0, %arg2 : i32
    %c0_i32 = arith.constant 0 : i32
    %2 = arith.minsi %1, %c0_i32 : i32
    %c0_i32_0 = arith.constant 0 : i32
    return %arg1, %2 : i32, i32
  }
  func.func @transform_2(%arg0: i32, %arg1: i32, %arg2: i32) -> (i32, i32) {
    %c1_i32 = arith.constant 1 : i32
    %0 = arith.muli %arg0, %c1_i32 : i32
    %1 = arith.addi %0, %arg2 : i32
    %c0_i32 = arith.constant 0 : i32
    %2 = arith.minsi %1, %c0_i32 : i32
    %c0_i32_0 = arith.constant 0 : i32
    %c0_i32_1 = arith.constant 0 : i32
    return %c0_i32_0, %2 : i32, i32
  }
  func.func @transform_3(%arg0: i32, %arg1: i32, %arg2: i32) -> (i32, i32) {
    %c1_i32 = arith.constant 1 : i32
    %0 = arith.muli %arg0, %c1_i32 : i32
    %1 = arith.addi %0, %arg1 : i32
    %c0_i32 = arith.constant 0 : i32
    %c0_i32_0 = arith.constant 0 : i32
    return %c0_i32, %1 : i32, i32
  }
}

</mosaic_0001>

<bundles_post_ra>
// kernel: tpu_custom_call.1
= control target key start
LH: loop header
LB: loop body
LE: loop exit
PB: predicated region body
PF: predicated region fallthrough
CT: control target
= control target key end

     0   :  { %8 = vsyncpa [#allocation4], 0  ;;  %s326_s0 = inlined_call_operand.hbm [shape: f32[6,200], index: 0, kind: input, shape index: {}]   ;;  %s327_s1 = inlined_call_operand.hbm [shape: f32[6,200], index: 1, kind: input, shape index: {}]   ;;  %s328_s2 = inlined_call_operand.vmem [shape: f32[1,200], index: 2, kind: input, shape index: {}]   ;;  %s329_s3 = inlined_call_operand.hbm [shape: f32[1,128], index: 3, kind: output, shape index: {}]  }
   0x1   :  { %9 = vsyncpa [#allocation7], 0 }
   0x2   :  { %10 = vsyncpa [#allocation5], 0  ;;  %s261_s12 = smov [#allocation3]   ;;  %s262_s14 = smov [#allocation6]  }
   0x3   :  { %s23_s13 = sshll.u32 %s261_s12, 4  ;;  %s39_s15 = sshll.u32 %s262_s14, 4  ;;  %s24_s13 = int_to_ptr.vmem [resolvable:$true] %s23_s13  ;;  %s40_s15 = int_to_ptr.vmem [resolvable:$true] %s39_s15 }
   0x4   :  { %s189_s18 = scalar_lea.hbm %s326_s0, 256 }
   0x5   :  { %p190_p0 = scmp.ne.s32.totalorder %s326_s0, %s189_s18  ;;  %p193_p1 = scmp.lt.u32.totalorder %s189_s18, %s326_s0 }
   0x7   :  { %p195_p2 = pnand %p193_p1, %p190_p0 }
   0x9   :  { %198 = shalt.err (!%p195_p2)
}
   0xa   :  { %s199_s23 = scalar_lea.vmem %s24_s13, 256  ;;  %p204_p4 = scmp.lt.s32.totalorder %s24_s13, %s24_s13 }
   0xb   :  { %p200_p3 = scmp.ne.s32.totalorder %s24_s13, %s199_s23  ;;  %p205_p5 = scmp.lt.s32.totalorder %s199_s23, %s199_s23 }
   0xd   :  { %p206_p6 = por %p205_p5, %p204_p4 }
   0xf   :  { %p207_p7 = pnand %p206_p6, %p200_p3 }
  0x11   :  { %210 = shalt.err (!%p207_p7)
}
  0x12   :  { %26 = dma.hbm_to_vmem [thread:$0]  %s326_s0, 256, %s24_s13, [#allocation4]  }
  0x13   :  { %s211_s28 = scalar_lea.hbm %s327_s1, 256 }
  0x14   :  { %p212_p8 = scmp.ne.s32.totalorder %s327_s1, %s211_s28  ;;  %p215_p9 = scmp.lt.u32.totalorder %s211_s28, %s327_s1 }
  0x16   :  { %p217_p10 = pnand %p215_p9, %p212_p8 }
  0x18   :  { %220 = shalt.err (!%p217_p10)
}
  0x19   :  { %s221_s6 = scalar_lea.vmem %s40_s15, 256  ;;  %p226_p12 = scmp.lt.s32.totalorder %s40_s15, %s40_s15 }
  0x1a   :  { %p222_p11 = scmp.ne.s32.totalorder %s40_s15, %s221_s6  ;;  %p227_p13 = scmp.lt.s32.totalorder %s221_s6, %s221_s6 }
  0x1c   :  { %p228_p0 = por %p227_p13, %p226_p12 }
  0x1e   :  { %p229_p1 = pnand %p228_p0, %p222_p11 }
  0x20   :  { %232 = shalt.err (!%p229_p1)
}
  0x21   :  { %42 = dma.hbm_to_vmem [thread:$0]  %s327_s1, 256, %s40_s15, [#allocation7]  }
  0x22   :  { %255 = dma.done.wait [#allocation4], 256  }
  0x23   :  { %256 = vsyncadd [#allocation4], 4294967040 }
  0x24   :  { %257 = dma.done.wait [#allocation7], 256  }
  0x25   :  { %258 = vsyncadd [#allocation7], 4294967040  ;;  %v95_v0 = vlaneseq  ;;  %v105_v4 = vld [vmem:[#allocation3] sm:$0xff]  ;;  %v106_v5 = vld [vmem:[#allocation6] sm:$0xff]  ;;  %s263_s11 = smov [#allocation8]  }
  0x26   :  { %v108_v6 = vsub.f32 %v105_v4, %v106_v5  ;;  %v125_v7 = vld [vmem:[#allocation3 + $0x8] sm:$0xff]  ;;  %v126_v8 = vld [vmem:[#allocation6 + $0x8] sm:$0xff]  ;;  %v184_v9 = vld [vmem:[%s328_s2] ss:$0 sm:$0xff]  ;;  %s167_s12 = sshll.u32 %s263_s11, 4  ;;  %s168_s12 = int_to_ptr.vmem [resolvable:$true] %s167_s12 }
  0x27   :  { %v101_v1 = vand.u32 127, %v95_v0  ;;  %v96_v2 = vshrl.u32 %v95_v0, 7  ;;  %v128_v10 = vsub.f32 %v125_v7, %v126_v8  ;;  %v185_v12 = vld [vmem:[%s328_s2 + $0x1] ss:$0 sm:$0xff]  ;;  %s233_s13 = scalar_lea.vmem %s168_s12, 16  ;;  %s237_s2 = scalar_lea.vmem %s168_s12, 32 }
  0x28   :  { %v109_v11 = vmul.f32 %v108_v6, %v108_v6  ;;  %p234_p2 = scmp.ne.s32.totalorder %s168_s12, %s233_s13  ;;  %p238_p3 = scmp.lt.s32.totalorder %s168_s12, %s168_s12 }
  0x29   :  { %v139_v3 = vadd.s32 128, %v101_v1  ;;  %vm99_vm0 = vcmp.lt.s32.totalorder %v96_v2, 6  ;;  %v129_v13 = vmul.f32 %v128_v10, %v128_v10  ;;  %p239_p4 = scmp.lt.s32.totalorder %s237_s2, %s233_s13 }
  0x2a   :  { %v116_v14 = vmul.f32 %v184_v9, %v109_v11 }
  0x2b   :  { %vm140_vm1 = vcmp.lt.s32.totalorder %v139_v3, 200  ;;  %v136_v15 = vmul.f32 %v185_v12, %v129_v13  ;;  %p240_p5 = por %p239_p4, %p238_p3 }
  0x2c   :  { %vm143_vm2 = vmand %vm99_vm0, %vm140_vm1  ;;  %v123_v16 = vsel %vm99_vm0, %v116_v14, 0.0 }
  0x2d   :  { %v144_v17 = vsel %vm143_vm2, %v136_v15, 0.0  ;;  %p241_p6 = pnand %p240_p5, %p234_p2 }
  0x2e   :  { %v145_v18 = vadd.f32 %v144_v17, %v123_v16 }
  0x30   :  { %v151_v19 = vrot.slane %v145_v18, 4 }
  0x32   :  { %v152_v20 = vadd.f32 %v151_v19, %v145_v18 }
  0x34   :  { %v153_v21 = vrot.slane %v152_v20, 2 }
  0x36   :  { %v154_v22 = vadd.f32 %v153_v21, %v152_v20 }
  0x38   :  { %v155_v23 = vrot.slane %v154_v22, 1 }
  0x3a   :  { %v156_v24 = vadd.f32 %v155_v23, %v154_v22 }
  0x3c   :  { %157 = vst [vmem:[#allocation8] sm:$0x1] %v156_v24 }
  0x3d   :  { %244 = shalt.err (!%p241_p6)
}
  0x3e   :  { %s245_s16 = scalar_lea.hbm %s329_s3, 16 }
  0x3f   :  { %p246_p7 = scmp.ne.s32.totalorder %s329_s3, %s245_s16  ;;  %p249_p8 = scmp.lt.u32.totalorder %s245_s16, %s329_s3 }
  0x41   :  { %p251_p9 = pnand %p249_p8, %p246_p7 }
  0x43   :  { %254 = shalt.err (!%p251_p9)
}
  0x44   :  { %170 = dma.vmem_to_hbm [thread:$0]  %s168_s12, 16, %s329_s3, [#allocation5]  }
  0x45   :  { %259 = dma.done.wait [#allocation5], 16  }
  0x46   :  { %260 = vsyncadd [#allocation5], 4294967280 }
  0x47   :  { %174 = vsyncpa [#allocation4], 1 }
  0x48   :  { %175 = vsyncpa [#allocation7], 1 }
  0x49   :  { %176 = vsyncpa [#allocation5], 1 }

</bundles_post_ra>
